<compile_context>
chip_gen: v6e
topology: v6e:2x2x1
jax: 0.10.0
libtpu: 0.0.40
codegen_flags: <defaults>
</compile_context>

<pallas_src>
import jax
import jax.numpy as jnp
from jax import lax
from jax.experimental import pallas as pl
from jax.experimental.pallas import tpu as pltpu

LANE = 128                          # VMEM minor-dim padding granularity
MAX_ROW_TILE = 1024                 # ~86% of HBM roofline; bigger is flat
VMEM_TILE_BUDGET = 24 * 1024 * 1024 # working-set target for pipelined tiles
VMEM_LIMIT_BYTES = 48 * 1024 * 1024 # < 64 MiB (v7x phys), << 128 MiB (v5e/v6e)


def _round_up(x, m):
    return ((x + m - 1) // m) * m


def _head_list(aux_loop, aux_struct):
    heads = [('react', 2)]
    if aux_loop:
        heads.append(('loop', 7))
    if aux_struct:
        heads.append(('struct', 3))
    return heads


# ------------------------- one-time parameter fusion -------------------------
def fuse_params(params, *, aux_loop=True, aux_struct=True, dtype=None):
    """Concatenate all projection heads into one (D, n_tot) weight + bias.

    Call ONCE at parameter-load time (hoisted out of the forward path)."""
    heads = _head_list(aux_loop, aux_struct)
    w = jnp.concatenate([params[k]['w'] for k, _ in heads], axis=1)
    b = jnp.concatenate([params[k]['b'] for k, _ in heads], axis=0)
    if dtype is not None:
        w = w.astype(dtype)
    return {'w': w,
            'b': b.astype(jnp.float32).reshape(1, -1),
            'heads': tuple(heads)}


# ------------------------------- Pallas kernel -------------------------------
def _project_out_kernel(x_ref, w_ref, b_ref, o_ref):
    # One MXU matmul covering every projection head; bias broadcast over rows.
    y = jnp.dot(x_ref[...], w_ref[...],
                preferred_element_type=jnp.float32,
                precision=lax.Precision.HIGHEST)
    o_ref[...] = (y + b_ref[...]).astype(o_ref.dtype)


def _resident_spec(shape, index_map):
    # Weight/bias blocks never change across grid steps -> single buffer.
    try:
        return pl.BlockSpec(shape, index_map, pipeline_mode=pl.Buffered(1))
    except TypeError:  # older JAX without pipeline_mode kwarg
        return pl.BlockSpec(shape, index_map)


def _pick_row_tile(M, D, x_itemsize, out_itemsize, w_itemsize):
    # Resident W (minor dim padded to 128 lanes in VMEM) + bias, single-buffered.
    fixed = D * LANE * w_itemsize + LANE * 4
    # Per output row: double-buffered x tile + double-buffered out tile.
    per_row = 2 * D * x_itemsize + 2 * LANE * out_itemsize
    tm = (VMEM_TILE_BUDGET - fixed) // per_row
    tm = (tm // 8) * 8
    tm = min(tm, MAX_ROW_TILE, _round_up(M, 8))
    if M >= 16:  # guarantee >= 2 grid steps so v7x's 2 TCs both get work
        tm = min(tm, _round_up(-(-M // 2), 8))
    return max(int(tm), 8)


# ---------------------------------- wrapper -----------------------------------
def project_out(x, fused):
    """ProjectOut forward (eval mode: Dropout is identity).

    x:     (B, L, d_model)
    fused: output of fuse_params(...)
    returns dict of (B, L, n_head) arrays.
    """
    w, b, heads = fused['w'], fused['b'], fused['heads']
    B, L, D = x.shape
    n_tot = w.shape[1]
    M = B * L

    x2 = x.reshape(M, D)            # Dropout (eval) = identity; reshape is free
    w = w.astype(x.dtype)           # matmul inputs in activation dtype (bf16-friendly)

    x_is = jnp.dtype(x.dtype).itemsize
    tm = _pick_row_tile(M, D, x_is, x_is, jnp.dtype(w.dtype).itemsize)
    grid = (pl.cdiv(M, tm),)        # ragged last block: OOB stores are masked

    cost = pl.CostEstimate(
        flops=2 * M * D * n_tot,
        bytes_accessed=M * D * x_is + D * n_tot * x_is + n_tot * 4
                       + M * n_tot * x_is,
        transcendentals=0)

    y = pl.pallas_call(
        _project_out_kernel,
        out_shape=jax.ShapeDtypeStruct((M, n_tot), x.dtype),
        grid_spec=pltpu.PrefetchScalarGridSpec(
            num_scalar_prefetch=0,
            grid=grid,
            in_specs=[pl.BlockSpec((tm, D), lambda i: (i, 0)),
                      _resident_spec((D, n_tot), lambda i: (0, 0)),
                      _resident_spec((1, n_tot), lambda i: (0, 0))],
            out_specs=pl.BlockSpec((tm, n_tot), lambda i: (i, 0))),
        compiler_params=pltpu.CompilerParams(
            dimension_semantics=("parallel",),
            vmem_limit_bytes=VMEM_LIMIT_BYTES),
        cost_estimate=cost,
    )(x2, w, b)

    out = {}
    off = 0
    for k, n in heads:
        out[k] = y[:, off:off + n].reshape(B, L, n)
        off += n
    return out


# ------------------------------ pure-JAX reference ----------------------------
def project_out_ref(x, params, *, aux_loop=True, aux_struct=True):
    heads = _head_list(aux_loop, aux_struct)
    return {k: jnp.dot(x, params[k]['w'], precision=lax.Precision.HIGHEST)
               + params[k]['b']
            for k, _ in heads}


# -------------------------------- param init ----------------------------------
def init_params(key, d_model, *, aux_loop=True, aux_struct=True):
    heads = _head_list(aux_loop, aux_struct)
    keys = jax.random.split(key, 2 * len(heads))
    bound = 1.0 / (d_model ** 0.5)                  # nn.Linear default init
    params = {}
    for i, (name, n) in enumerate(heads):
        params[name] = {
            'w': jax.random.uniform(keys[2 * i], (d_model, n), jnp.float32,
                                    -bound, bound),
            'b': jax.random.uniform(keys[2 * i + 1], (n,), jnp.float32,
                                    -bound, bound),
        }
    return params


# ----------------------------------- main --------------------------------------
if __name__ == "__main__":
    key = jax.random.PRNGKey(0)
    kx, kx2, kp = jax.random.split(key, 3)

    D = 32
    params = init_params(kp, D, aux_loop=True, aux_struct=True)
    fused = fuse_params(params, aux_loop=True, aux_struct=True)  # once, at load time

    # Case 1: even rows (M multiple of tile)
    B, L = 2, 8
    x = jax.random.normal(kx, (B, L, D), jnp.float32)
    out = project_out(x, fused)
    jax.block_until_ready(out)
    ref = project_out_ref(x, params, aux_loop=True, aux_struct=True)
    for k, r in ref.items():
        assert out[k].shape == r.shape, (k, out[k].shape, r.shape)
        assert bool(jnp.all(jnp.isfinite(out[k]))), k
        assert bool(jnp.allclose(out[k], r, atol=1e-4, rtol=1e-4)), k

    # Case 2: ragged rows (M not a multiple of the tile) exercises masked stores
    B2, L2 = 3, 7
    x2 = jax.random.normal(kx2, (B2, L2, D), jnp.float32)
    out2 = project_out(x2, fused)
    jax.block_until_ready(out2)
    ref2 = project_out_ref(x2, params, aux_loop=True, aux_struct=True)
    for k, r in ref2.items():
        assert out2[k].shape == r.shape, (k, out2[k].shape, r.shape)
        assert bool(jnp.all(jnp.isfinite(out2[k]))), k
        assert bool(jnp.allclose(out2[k], r, atol=1e-4, rtol=1e-4)), k

    # TODO(synk): training-mode dropout (random mask) not implemented; eval
    # mode (identity) matches the reference module's inference behavior.
    print("KERNEL_OK")
</pallas_src>

<mosaic_0001>
module attributes {stable_mosaic.version = 11 : i64} {
  func.func @_project_out_kernel(%arg0: i32, %arg1: memref<8x32xf32, #tpu.memory_space<vmem>>, %arg2: memref<32x12xf32, #tpu.memory_space<vmem>>, %arg3: memref<1x12xf32, #tpu.memory_space<vmem>>, %arg4: memref<8x12xf32, #tpu.memory_space<vmem>>) attributes {dimension_semantics = [#tpu.dimension_semantics<parallel>], iteration_bounds = array<i64: 2>, scalar_prefetch = 0 : i64, scratch_operands = 0 : i64, tpu.core_type = #tpu.core_type<tc>, window_params = [{transform_indices = @transform_0, window_bounds = array<i64: 8, 32>}, {pipeline_mode = #tpu.pipeline_mode<synchronous>, transform_indices = @transform_1, window_bounds = array<i64: 32, 12>}, {pipeline_mode = #tpu.pipeline_mode<synchronous>, transform_indices = @transform_2, window_bounds = array<i64: 1, 12>}, {transform_indices = @transform_3, window_bounds = array<i64: 8, 12>}]} {
    %c0 = arith.constant 0 : index
    %c0_0 = arith.constant 0 : index
    %0 = vector.load %arg1[%c0, %c0_0] : memref<8x32xf32, #tpu.memory_space<vmem>>, vector<8x32xf32>
    %c0_1 = arith.constant 0 : index
    %c0_2 = arith.constant 0 : index
    %1 = vector.load %arg2[%c0_1, %c0_2] : memref<32x12xf32, #tpu.memory_space<vmem>>, vector<32x12xf32>
    %cst = arith.constant dense<0.000000e+00> : vector<8x12xf32>
    %2 = tpu.matmul %0, %1, %cst {dimension_numbers = #tpu.dot_dimension_numbers<[1], [0], [0], [1], [0, 0, 1, 1], [], []>, precision = #tpu.contract_precision<fp32>} : vector<8x32xf32>, vector<32x12xf32>, vector<8x12xf32> -> vector<8x12xf32>
    %c0_3 = arith.constant 0 : index
    %c0_4 = arith.constant 0 : index
    %3 = vector.load %arg3[%c0_3, %c0_4] : memref<1x12xf32, #tpu.memory_space<vmem>>, vector<1x12xf32>
    %4 = vector.broadcast %3 : vector<1x12xf32> to vector<8x12xf32>
    %5 = arith.addf %2, %4 : vector<8x12xf32>
    %c0_5 = arith.constant 0 : index
    %c0_6 = arith.constant 0 : index
    %6 = vector.load %arg4[%c0_5, %c0_6] : memref<8x12xf32, #tpu.memory_space<vmem>>, vector<8x12xf32>
    tpu.vector_store %arg4[%c0_5, %c0_6], %5 {strides = array<i32>} : memref<8x12xf32, #tpu.memory_space<vmem>>, vector<8x12xf32>,
    return
  }
  func.func @transform_0(%arg0: i32) -> (i32, i32) {
    %c0_i32 = arith.constant 0 : i32
    %c0_i32_0 = arith.constant 0 : i32
    return %arg0, %c0_i32 : i32, i32
  }
  func.func @transform_1(%arg0: i32) -> (i32, i32) {
    %c0_i32 = arith.constant 0 : i32
    %c0_i32_0 = arith.constant 0 : i32
    %c0_i32_1 = arith.constant 0 : i32
    return %c0_i32, %c0_i32_0 : i32, i32
  }
  func.func @transform_2(%arg0: i32) -> (i32, i32) {
    %c0_i32 = arith.constant 0 : i32
    %c0_i32_0 = arith.constant 0 : i32
    %c0_i32_1 = arith.constant 0 : i32
    return %c0_i32, %c0_i32_0 : i32, i32
  }
  func.func @transform_3(%arg0: i32) -> (i32, i32) {
    %c0_i32 = arith.constant 0 : i32
    %c0_i32_0 = arith.constant 0 : i32
    return %arg0, %c0_i32 : i32, i32
  }
}

</mosaic_0001>

<bundles_post_ra>
// kernel: tpu_custom_call.1
= control target key start
LH: loop header
LB: loop body
LE: loop exit
PB: predicated region body
PF: predicated region fallthrough
CT: control target
= control target key end

     0   :  { %8 = vsyncpa [#allocation3], 0  ;;  %s1158_s0 = inlined_call_operand.vmem [shape: f32[16,32], index: 0, kind: input, shape index: {}]   ;;  %s1159_s1 = inlined_call_operand.vmem [shape: f32[32,12], index: 1, kind: input, shape index: {}]   ;;  %s1160_s2 = inlined_call_operand.vmem [shape: f32[1,12], index: 2, kind: input, shape index: {}]   ;;  %s1161_s3 = inlined_call_operand.hbm [shape: f32[16,12], index: 3, kind: output, shape index: {}]  }
   0x1   :  { %10 = vsyncpa [#allocation3 + $0x1], 0  ;;  %s975_s12 = smov 0   ;;  %s977_s13 = smov 0  }
   0x2   :  { %s979_s14 = smov 0   ;;  %s981_s15 = smov 0  }
   0x3 LB: > { %s996_s16 = sadd.s32 4294967295, %s950_s15   ;;  %s742_s17 = sadd.s32 4294967294, %s950_s15   ;;  %s950_s15 = sphi %s981_s15, %s1167_s15   ;;  %s946_s14 = sphi %s979_s14, %s1166_s14   ;;  %s942_s13 = sphi %s977_s13, %s1165_s13   ;;  %s938_s12 = sphi %s975_s12, %s1164_s12  }
   0x4   : > { %s1000_s18 = sadd.s32 1, %s950_s15   ;;  %s91_s19 = sadd.s32 1, %s946_s14 }
   0x5   : > { %s88_s20 = ssub.s32 %s950_s15, %s1000_s18  ;;  %p101_p0 = scmp.ne.s32.totalorder %s946_s14, %s942_s13 }
   0x6   : > { %p89_p1 = scmp.eq.s32.totalorder %s88_s20, 0  ;;  %p102_p2 = scmp.eq.s32.totalorder %s996_s16, 1 }
   0x7   : > { %p107_p3 = scmp.ne.s32.totalorder %s942_s13, %s938_s12  ;;  %p108_p4 = scmp.eq.s32.totalorder %s742_s17, 1 }
   0x8   : > { %s1011_s21 = scalar_select %p89_p1, %s946_s14, %s91_s19  }
   0x9   : > { %p1013_p5 = por %p102_p2, %p101_p0  ;;  %p1017_p6 = por %p108_p4, %p107_p3 }
   0xa   : > { %p745_p7 = scmp.ge.s32.totalorder %s950_s15, 1  ;;  %p139_p8 = scmp.lt.s32.totalorder %s950_s15, 3 }
   0xc   : > { %p140_p9 = pnand %p745_p7, %p139_p8 }
   0xd   : > { %p162_p10 = scmp.lt.s32.totalorder (!%p140_p9), %s996_s16, 1  ;;  %s159_s17 = sand.u32 (!%p140_p9), 1, %s942_s13  }
   0xe   : > { %143 = sbr.rel (%p140_p9) target bundleno = 264 (0x108), region = 32  ;;  %s746_s19 = sshll.u32 (!%p140_p9), %s159_s17, 3 }
   0xf   : > { %s750_s20 = sshll.u32 (!%p140_p9), %s996_s16, 7  ;;  %s161_s24 = scalar_lea.vmem (!%p140_p9), [#allocation2], %s746_s19 }
  0x10   : > { %s683_s25 = sshll.u32 (!%p140_p9), %s161_s24, 4  ;;  %s1123_s28 = scalar_lea.hbm (!%p140_p9), %s1161_s3, %s750_s20  ;;  %s684_s25 = int_to_ptr.vmem [resolvable:$true] %s683_s25 }
  0x11   : > { %s670_s29 = scalar_lea.sflag (!%p140_p9), [#allocation3], %s159_s17  ;;  %s890_s30 = scalar_lea.vmem (!%p140_p9), %s684_s25, 128 }
  0x12   : > { %p891_p11 = scmp.ne.s32.totalorder (!%p140_p9), %s684_s25, %s890_s30 }
  0x13   : > { %v170_v0 = vld [vmem:[%s1159_s1 + $0x18] sm:$0xff]  ;;  %v169_v1 = vld [vmem:[%s1159_s1 + $0x10] sm:$0xff]  ;;  %v168_v2 = vld [vmem:[%s1159_s1 + $0x8] sm:$0xff]  ;;  %v952_v3 = vmov 0.0   ;;  %vm953_vm0 = vmmov 0   ;;  %s163_s5 = scalar_select %p162_p10, %s996_s16, 1 }
  0x14   : > { %783 = vmatprep.subr.mxu0 %v952_v3  ;;  %v1034_v4 = vand.u32 4294901760, %v170_v0  ;;  %794 = vmatprep.subr.mxu1 %v952_v3  ;;  %v1037_v5 = vand.u32 4294901760, %v169_v1  ;;  %v1039_v6 = vand.u32 4294901760, %v168_v2  ;;  %v167_v7 = vld [vmem:[%s1159_s1] sm:$0xff]  ;;  %vm178_vm1 = vcmask 261120   ;;  %p892_p12 = pnand %p891_p11, %p1013_p5  ;;  %s954_s16 = smov [#allocation2]  }
  0x15   : > { %v1044_v8 = vand.u32 4294901760, %v167_v7  ;;  %791 = vmatprep.mubr.msk.f32.mxu0 %vm953_vm0, %v952_v3  ;;  %802 = vmatprep.mubr.msk.f32.mxu1 %vm953_vm0, %v952_v3  ;;  %s747_s6 = sshll.u32 %s163_s5, 3  ;;  %v748_v36 = vld [vmem:[%s1160_s2] ss:$0 sm:$0xff]  ;;  %vm667_vm2 = vcmask 97280   ;;  %s894_s4 = sshll.u32 %s954_s16, 4  ;;  %s895_s4 = int_to_ptr.vmem [resolvable:$false] %s894_s4 }
  0x16   : > { %784 = vmatpush3.msra.mxu0 %v1034_v4  ;;  %v287_v9 = vsub.f32 %v170_v0, %v1034_v4  ;;  %v1054_v10 = vsub.f32 %v169_v1, %v1037_v5  ;;  %v1057_v11 = vsub.f32 %v168_v2, %v1039_v6  ;;  %s165_s9 = scalar_lea.vmem %s1158_s0, %s747_s6  ;;  %p893_p13 = pneg %p892_p12 }
  0x17   : > { %785 = vmatprep.subr.mxu0 %v952_v3  ;;  %v1061_v12 = vsub.f32 %v167_v7, %v1044_v8  ;;  %v166_v17 = vld [vmem:[%s165_s9] sm:$0xff]  ;;  %s896_s5 = scalar_lea.vmem %s895_s4, 256  ;;  %p897_p0 = scmp.lt.s32.totalorder %s684_s25, %s895_s4 }
  0x18   : > { %v288_v13 = vand.u32 4294901760, %v287_v9  ;;  %786 = vmatpush3.msra.mxu0 %v1037_v5  ;;  %v295_v14 = vand.u32 4294901760, %v1054_v10  ;;  %v302_v15 = vand.u32 4294901760, %v1057_v11  ;;  %v180_v21 = vsel %vm178_vm1, %v166_v17, 0  ;;  %p898_p1 = scmp.lt.s32.totalorder %s896_s5, %s890_s30 }
  0x19   : > { %787 = vmatprep.subr.mxu0 %v952_v3  ;;  %v309_v16 = vand.u32 4294901760, %v1061_v12  ;;  %v251_v22 = vand.u32 4294901760, %v180_v21 }
  0x1a   : > { %v289_v18 = vsub.f32 %v287_v9, %v288_v13  ;;  %v296_v19 = vsub.f32 %v1054_v10, %v295_v14  ;;  %788 = vmatpush3.msra.mxu0 %v1039_v6  ;;  %v303_v20 = vsub.f32 %v1057_v11, %v302_v15  ;;  %p899_p2 = por %p898_p1, %p897_p0 }
  0x1b   : > { %789 = vmatprep.subr.mxu0 %v952_v3  ;;  %v310_v25 = vsub.f32 %v1061_v12, %v309_v16  ;;  %v252_v26 = vsub.f32 %v180_v21, %v251_v22 }
  0x1c   : > { %v290_v23 = vand.u32 4294901760, %v289_v18  ;;  %v297_v24 = vand.u32 4294901760, %v296_v19  ;;  %790 = vmatpush3.msra.mxu0 %v1044_v8  ;;  %v304_v27 = vand.u32 4294901760, %v303_v20  ;;  %p900_p3 = pnand %p899_p2, %p893_p13 }
  0x1d   : > { %805 = vmatprep.subr.mxu0 %v952_v3  ;;  %v253_v28 = vand.u32 4294901760, %v252_v26  ;;  %v311_v29 = vand.u32 4294901760, %v310_v25 }
  0x1e   : > { %795 = vmatpush3.msra.mxu1 %v290_v23 }
  0x1f   : > { %796 = vmatprep.subr.mxu1 %v952_v3  ;;  %v254_v30 = vsub.f32 %v252_v26, %v253_v28 }
  0x20   : > { %797 = vmatpush3.msra.mxu1 %v297_v24 }
  0x21   : > { %798 = vmatprep.subr.mxu1 %v952_v3  ;;  %v255_v31 = vand.u32 4294901760, %v254_v30 }
  0x22   : > { %799 = vmatpush3.msra.mxu1 %v304_v27 }
  0x23   : > { %800 = vmatprep.subr.mxu1 %v952_v3  ;;  %792 = vmatmul.mubr.f32.vlgmr.msra.gmra.mxu0 %v255_v31 }
  0x24   : > { %801 = vmatpush3.msra.mxu1 %v311_v29  ;;  %806 = vmatpush3.msra.mxu0 %v287_v9 }
  0x25   : > { %803 = vmatmul.mubr.f32.vlgmr.msra.gmra.mxu1 %v251_v22  ;;  %816 = vmatprep.subr.mxu1 %v952_v3 }
  0x26   : > { %807 = vmatprep.subr.mxu0 %v952_v3  ;;  %817 = vmatpush3.msra.mxu1 %v1034_v4 }
  0x27   : > { %808 = vmatpush3.msra.mxu0 %v1054_v10  ;;  %818 = vmatprep.subr.mxu1 %v952_v3 }
  0x28   : > { %809 = vmatprep.subr.mxu0 %v952_v3  ;;  %819 = vmatpush3.msra.mxu1 %v1037_v5 }
  0x29   : > { %810 = vmatpush3.msra.mxu0 %v1057_v11  ;;  %820 = vmatprep.subr.mxu1 %v952_v3 }
  0x2a   : > { %811 = vmatprep.subr.mxu0 %v952_v3  ;;  %821 = vmatpush3.msra.mxu1 %v1039_v6 }
  0x2b   : > { %812 = vmatpush3.msra.mxu0 %v1061_v12  ;;  %813 = vmatprep.mubr.msk.f32.mxu0 %vm953_vm0, %v952_v3 }
  0x2c   : > { %822 = vmatprep.subr.mxu1 %v952_v3  ;;  %814 = vmatmul.mubr.f32.vlgmr.msra.gmra.mxu0 %v252_v26 }
  0x2d   : > { %823 = vmatpush3.msra.mxu1 %v1044_v8  ;;  %824 = vmatprep.mubr.msk.f32.mxu1 %vm953_vm0, %v952_v3 }
  0x2e   : > { %827 = vmatprep.subr.mxu0 %v952_v3  ;;  %825 = vmatmul.mubr.f32.vlgmr.msra.gmra.mxu1 %v253_v28 }
  0x2f   : > { %828 = vmatpush3.msra.mxu0 %v288_v13  ;;  %838 = vmatprep.subr.mxu1 %v952_v3 }
  0x30   : > { %829 = vmatprep.subr.mxu0 %v952_v3  ;;  %839 = vmatpush3.msra.mxu1 %v1034_v4 }
  0x31   : > { %830 = vmatpush3.msra.mxu0 %v295_v14  ;;  %840 = vmatprep.subr.mxu1 %v952_v3 }
  0x32   : > { %831 = vmatprep.subr.mxu0 %v952_v3  ;;  %841 = vmatpush3.msra.mxu1 %v1037_v5 }
  0x33   : > { %832 = vmatpush3.msra.mxu0 %v302_v15  ;;  %842 = vmatprep.subr.mxu1 %v952_v3 }
  0x34   : > { %833 = vmatprep.subr.mxu0 %v952_v3  ;;  %843 = vmatpush3.msra.mxu1 %v1039_v6 }
  0x35   : > { %834 = vmatpush3.msra.mxu0 %v309_v16  ;;  %835 = vmatprep.mubr.msk.f32.mxu0 %vm953_vm0, %v952_v3 }
  0x36   : > { %844 = vmatprep.subr.mxu1 %v952_v3  ;;  %836 = vmatmul.mubr.f32.vlgmr.msra.gmra.mxu0 %v251_v22 }
  0x37   : > { %845 = vmatpush3.msra.mxu1 %v1044_v8  ;;  %846 = vmatprep.mubr.msk.f32.mxu1 %vm953_vm0, %v952_v3 }
  0x38   : > { %847 = vmatmul.mubr.f32.vlgmr.msra.gmra.mxu1 %v251_v22 }
  0xe3   : > { %v257_v32 = vpop.f32.mrf.mxu0 }
  0xe4   : > { %v258_v37 = vadd.f32 %v748_v36, %v257_v32 }
  0xe5   : > { %v348_v33 = vpop.f32.mrf.mxu1  ;;  %v793_v34 = vpop.f32.mrf.mxu0 }
  0xe6   : > { %v349_v41 = vadd.f32 %v348_v33, %v258_v37 }
  0xe7   : > { %v804_v35 = vpop.f32.mrf.mxu1 }
  0xec   : > { %v428_v38 = vpop.f32.mrf.mxu0 }
  0xed   : > { %v429_v43 = vadd.f32 %v428_v38, %v349_v41 }
  0xee   : > { %v505_v39 = vpop.f32.mrf.mxu1  ;;  %v815_v40 = vpop.f32.mrf.mxu0 }
  0xef   : > { %v506_v44 = vadd.f32 %v505_v39, %v429_v43 }
  0xf0   : > { %v826_v42 = vpop.f32.mrf.mxu1 }
  0xf6   : > { %v588_v45 = vpop.f32.mrf.mxu0 }
  0xf7   : > { %v589_v46 = vadd.f32 %v588_v45, %v506_v44 }
  0xf8   : > { %v663_v47 = vpop.f32.mrf.mxu1  ;;  %v837_v48 = vpop.f32.mrf.mxu0 }
  0xf9   : > { %v664_v49 = vadd.f32 %v663_v47, %v589_v46 }
  0xfa   : > { %v848_v50 = vpop.f32.mrf.mxu1 }
  0xfb   : > { %668 = vst.msk [vmem:[%s161_s24] sm:$0xff] %vm667_vm2, %v664_v49 }
  0xfc   : > { %903 = shalt.err (!%p900_p3)
}
  0xfd   : > { %s904_s6 = scalar_lea.hbm %s1123_s28, 128  ;;  %s908_s9 = scalar_lea.hbm %s1161_s3, 256 }
  0xfe   : > { %p905_p4 = scmp.ne.s32.totalorder %s1123_s28, %s904_s6  ;;  %p909_p9 = scmp.lt.s32.totalorder %s1123_s28, %s1161_s3 }
  0xff   : > { %p910_p10 = scmp.lt.s32.totalorder %s908_s9, %s904_s6 }
 0x100   : > { %p906_p7 = pnand %p905_p4, %p1013_p5 }
 0x101   : > { %p911_p11 = por %p910_p10, %p909_p9 }
 0x102   : > { %p907_p8 = pneg %p906_p7 }
 0x104   : > { %p912_p12 = pnand %p911_p11, %p907_p8 }
 0x106   : > { %915 = shalt.err (!%p912_p12)
}
 0x107   : > { %849 = dma.vmem_to_hbm [thread:$0]  (%p1013_p5), %s684_s25, 128, %s1123_s28, %s670_s29  }
 0x108 PF: > { %p855_p13 = scmp.ge.s32.totalorder %s950_s15, 2  ;;  %s695_s17 = sand.u32 1, %s938_s12  }
 0x109   : > { %s696_s19 = scalar_lea.sflag [#allocation3], %s695_s17 }
 0x10a   : > { %p852_p0 = pnand %p855_p13, %p1017_p6 }
 0x10c   : > { %p853_p1 = pneg %p852_p0 }
 0x10e   : > { %933 = dma.done.wait (%p853_p1), %s696_s19, 128  }
 0x10f   : > { %935 = vsyncadd (%p853_p1), %s696_s19, 4294967168  ;;  %p13_p2 = scmp.ge.s32.totalorder %s1000_s18, 4   ;;  %s1164_s12 = smov %s942_s13 }
 0x110   : > { %s1165_s13 = smov %s946_s14  ;;  %s1166_s14 = smov %s1011_s21 }
 0x111   : > { %s1167_s15 = smov %s1000_s18  ;;  %15 = sbr.rel (!%p13_p2) target bundleno = 3 (0x3), region = 67 }
 0x116   :  { %701 = vsyncpa [#allocation3], 1 }
 0x117   :  { %703 = vsyncpa [#allocation3 + $0x1], 1 }

</bundles_post_ra>
